<compile_context>
chip_gen: v5e
topology: v5e:2x2
jax: 0.10.0
libtpu: 0.0.40
codegen_flags: <defaults>
</compile_context>

<pallas_src>
import math

import jax
import jax.numpy as jnp
from jax import lax
from jax.experimental import pallas as pl
from jax.experimental.pallas import tpu as pltpu

_LANES = 128            # vreg lane width
_ROW_ALIGN = 16         # rows per tile must be even & each half 8-sublane aligned
_VMEM_BUDGET = 8 << 20  # bytes for (bits + out) x double-buffering per grid step


def box_muller_kernel(bits_ref, o_ref):
    """(R, C) uint32 random bits -> (R, C) i.i.d. N(0,1) float32 samples.

    Top half of the rows supplies u1, bottom half supplies u2.  Both
    Box-Muller outputs are produced with a single cos(): the second branch is
    s = +/- sqrt(1 - c^2) with a random sign taken from bit 0 of the u2 word
    (unused by the mantissa trick), which reproduces the exact joint
    distribution of (cos(theta), sin(theta)).
    """
    half = o_ref.shape[0] // 2
    b1 = bits_ref[pl.ds(0, half), :]
    b2 = bits_ref[pl.ds(half, half), :]

    # Mantissa trick: m = 1.xxxx in [1, 2) built from the top 23 random bits.
    m1 = lax.bitcast_convert_type((b1 >> 9) | 0x3F800000, jnp.float32)
    m2 = lax.bitcast_convert_type((b2 >> 9) | 0x3F800000, jnp.float32)

    # u1 = 2 - m1 in (0, 1]  ->  r = sqrt(-2 ln u1)   (never log(0))
    r = jnp.sqrt(-2.0 * jnp.log(2.0 - m1))
    # theta = 2*pi*m2  ==  2*pi*(m2 - 1)  (mod 2*pi)
    c = jnp.cos((2.0 * math.pi) * m2)
    s_mag = jnp.sqrt(jnp.maximum(1.0 - c * c, 0.0))
    s = jnp.where((b2 & 1) == 0, s_mag, -s_mag)

    o_ref[pl.ds(0, half), :] = (r * c).astype(o_ref.dtype)
    o_ref[pl.ds(half, half), :] = (r * s).astype(o_ref.dtype)


def _round_up(n, m):
    return ((n + m - 1) // m) * m


def _sample_normal_slab(key, rows, cols, dtype):
    """Produce a (>=rows, cols) slab of N(0,1) samples via the Pallas kernel."""
    rows_aligned = max(_ROW_ALIGN, _round_up(rows, _ROW_ALIGN))

    # Tile row count bounded by VMEM budget: bits (4B) + out (4B) per element,
    # both double-buffered  ->  cols * 16 bytes per row per grid step.
    tr_budget = max(_ROW_ALIGN, (_VMEM_BUDGET // (cols * 16)) // _ROW_ALIGN * _ROW_ALIGN)
    num_tiles = pl.cdiv(rows_aligned, tr_budget)
    tr = _round_up(pl.cdiv(rows_aligned, num_tiles), _ROW_ALIGN)
    padded_rows = num_tiles * tr

    # One uint32 of entropy per output element (Box-Muller: 2 uniforms -> 2 normals).
    bits = jax.random.bits(key, (padded_rows, cols), dtype=jnp.uint32)

    slab = pl.pallas_call(
        box_muller_kernel,
        out_shape=jax.ShapeDtypeStruct((padded_rows, cols), dtype),
        grid=(num_tiles,),
        in_specs=[pl.BlockSpec((tr, cols), lambda i: (i, 0))],
        out_specs=pl.BlockSpec((tr, cols), lambda i: (i, 0)),
        compiler_params=pltpu.CompilerParams(
            # "parallel" lets megacore chips shard the row axis across TCs.
            dimension_semantics=("parallel",)),
    )(bits)
    return slab


def random_embedding_forward(x, model_dim, key=None, *, dtype=jnp.float32):
    """JAX/Pallas equivalent of RandomEmbeddingModel.forward.

    x        : array whose leading dim gives the batch size (contents ignored).
    model_dim: embedding width.
    key      : JAX PRNG key (replaces torch's advancing global RNG state).
    Returns  : (x.shape[0], model_dim) array of i.i.d. N(0,1) samples.
    """
    if key is None:
        key = jax.random.PRNGKey(0)

    batch = x.shape[0]

    if model_dim % _LANES == 0:
        # Lane-dense already: write (batch, model_dim) directly, no relayout.
        slab = _sample_normal_slab(key, batch, model_dim, dtype)
        return slab[:batch]

    # Narrow model_dim: generate a lane-dense (rows, 128) slab (unmasked vst,
    # full vreg utilization), then do a single cheap relayout in the wrapper.
    total = batch * model_dim
    rows = pl.cdiv(total, _LANES)
    slab = _sample_normal_slab(key, rows, _LANES, dtype)
    return slab.reshape(-1)[:total].reshape(batch, model_dim)


if __name__ == "__main__":
    key = jax.random.PRNGKey(0)
    kx, kr = jax.random.split(key)

    # Small NCHW-style input consistent with an encoder feed: (B=2, C=4, H=16, W=16)
    x = jax.random.normal(kx, (2, 4, 16, 16), dtype=jnp.float32)
    model_dim = 32

    out = random_embedding_forward(x, model_dim, key=kr)
    out = jax.block_until_ready(out)

    assert out.shape == (x.shape[0], model_dim), out.shape
    assert out.dtype == jnp.float32, out.dtype
    assert bool(jnp.all(jnp.isfinite(out)))

    print("KERNEL_OK")
</pallas_src>

<mosaic_0001>
module attributes {stable_mosaic.version = 11 : i64} {
  func.func @box_muller_kernel(%arg0: i32, %arg1: memref<16x128xi32, #tpu.memory_space<vmem>>, %arg2: memref<16x128xf32, #tpu.memory_space<vmem>>) attributes {dimension_semantics = [#tpu.dimension_semantics<parallel>], iteration_bounds = array<i64: 1>, scalar_prefetch = 0 : i64, scratch_operands = 0 : i64, tpu.core_type = #tpu.core_type<tc>, window_params = [{transform_indices = @transform_0, window_bounds = array<i64: 16, 128>}, {transform_indices = @transform_1, window_bounds = array<i64: 16, 128>}]} {
    %c0 = arith.constant 0 : index
    %c0_0 = arith.constant 0 : index
    %0 = vector.load %arg1[%c0, %c0_0] : memref<16x128xi32, #tpu.memory_space<vmem>>, vector<8x128xi32>
    %c8 = arith.constant 8 : index
    %c0_1 = arith.constant 0 : index
    %1 = vector.load %arg1[%c8, %c0_1] : memref<16x128xi32, #tpu.memory_space<vmem>>, vector<8x128xi32>
    %c9_i32 = arith.constant 9 : i32
    %2 = vector.broadcast %c9_i32 : i32 to vector<8x128xi32>
    %3 = arith.shrui %0, %2 : vector<8x128xi32>
    %c1065353216_i32 = arith.constant 1065353216 : i32
    %4 = vector.broadcast %c1065353216_i32 : i32 to vector<8x128xi32>
    %5 = arith.ori %3, %4 : vector<8x128xi32>
    %6 = tpu.bitcast %5 : vector<8x128xi32> -> vector<8x128xf32>
    %c9_i32_2 = arith.constant 9 : i32
    %7 = vector.broadcast %c9_i32_2 : i32 to vector<8x128xi32>
    %8 = arith.shrui %1, %7 : vector<8x128xi32>
    %c1065353216_i32_3 = arith.constant 1065353216 : i32
    %9 = vector.broadcast %c1065353216_i32_3 : i32 to vector<8x128xi32>
    %10 = arith.ori %8, %9 : vector<8x128xi32>
    %11 = tpu.bitcast %10 : vector<8x128xi32> -> vector<8x128xf32>
    %cst = arith.constant 2.000000e+00 : f32
    %12 = vector.broadcast %cst : f32 to vector<8x128xf32>
    %13 = arith.subf %12, %6 : vector<8x128xf32>
    %14 = math.log %13 : vector<8x128xf32>
    %cst_4 = arith.constant -2.000000e+00 : f32
    %15 = vector.broadcast %cst_4 : f32 to vector<8x128xf32>
    %16 = arith.mulf %15, %14 : vector<8x128xf32>
    %17 = math.sqrt %16 : vector<8x128xf32>
    %cst_5 = arith.constant 6.28318548 : f32
    %18 = vector.broadcast %cst_5 : f32 to vector<8x128xf32>
    %19 = arith.mulf %18, %11 : vector<8x128xf32>
    %20 = math.cos %19 : vector<8x128xf32>
    %21 = arith.mulf %20, %20 : vector<8x128xf32>
    %cst_6 = arith.constant 1.000000e+00 : f32
    %22 = vector.broadcast %cst_6 : f32 to vector<8x128xf32>
    %23 = arith.subf %22, %21 : vector<8x128xf32>
    %cst_7 = arith.constant 0.000000e+00 : f32
    %24 = vector.broadcast %cst_7 : f32 to vector<8x128xf32>
    %25 = arith.maximumf %23, %24 : vector<8x128xf32>
    %26 = math.sqrt %25 : vector<8x128xf32>
    %c1_i32 = arith.constant 1 : i32
    %27 = vector.broadcast %c1_i32 : i32 to vector<8x128xi32>
    %28 = arith.andi %1, %27 : vector<8x128xi32>
    %c0_i32 = arith.constant 0 : i32
    %29 = vector.broadcast %c0_i32 : i32 to vector<8x128xi32>
    %30 = arith.cmpi eq, %28, %29 : vector<8x128xi32>
    %cst_8 = arith.constant 0.000000e+00 : f32
    %31 = vector.broadcast %cst_8 : f32 to vector<8x128xf32>
    %32 = arith.subf %31, %26 : vector<8x128xf32>
    %33 = arith.select %30, %26, %32 : vector<8x128xi1>, vector<8x128xf32>
    %34 = arith.mulf %17, %20 : vector<8x128xf32>
    %c0_9 = arith.constant 0 : index
    %c0_10 = arith.constant 0 : index
    %35 = vector.load %arg2[%c0_9, %c0_10] : memref<16x128xf32, #tpu.memory_space<vmem>>, vector<8x128xf32>
    tpu.vector_store %arg2[%c0_9, %c0_10], %34 {strides = array<i32>} : memref<16x128xf32, #tpu.memory_space<vmem>>, vector<8x128xf32>,
    %36 = arith.mulf %17, %33 : vector<8x128xf32>
    %c8_11 = arith.constant 8 : index
    %c0_12 = arith.constant 0 : index
    %37 = vector.load %arg2[%c8_11, %c0_12] : memref<16x128xf32, #tpu.memory_space<vmem>>, vector<8x128xf32>
    tpu.vector_store %arg2[%c8_11, %c0_12], %36 {strides = array<i32>} : memref<16x128xf32, #tpu.memory_space<vmem>>, vector<8x128xf32>,
    return
  }
  func.func @transform_0(%arg0: i32) -> (i32, i32) {
    %c0_i32 = arith.constant 0 : i32
    %c0_i32_0 = arith.constant 0 : i32
    return %arg0, %c0_i32 : i32, i32
  }
  func.func @transform_1(%arg0: i32) -> (i32, i32) {
    %c0_i32 = arith.constant 0 : i32
    %c0_i32_0 = arith.constant 0 : i32
    return %arg0, %c0_i32 : i32, i32
  }
}

</mosaic_0001>

<bundles_post_ra>
// kernel: tpu_custom_call.1
= control target key start
LH: loop header
LB: loop body
LE: loop exit
PB: predicated region body
PF: predicated region fallthrough
CT: control target
= control target key end

     0   :  { %6 = vsyncpa [#allocation3], 0  ;;  %s409_s0 = inlined_call_operand.hbm [shape: u32[16,128], index: 0, kind: input, shape index: {}]   ;;  %s410_s1 = inlined_call_operand.hbm [shape: f32[16,128], index: 1, kind: output, shape index: {}]  }
   0x1   :  { %7 = vsyncpa [#allocation4], 0  ;;  %s12_s8 = sshll.u32 %s409_s0, 4  ;;  %s318_s9 = smov [#allocation2]   ;;  %s13_s8 = int_to_ptr.hbm [resolvable:$true] %s12_s8 }
   0x2   :  { %s14_s10 = sshll.u32 %s318_s9, 4  ;;  %s319_s11 = smov 128   ;;  %s15_s10 = int_to_ptr.vmem [resolvable:$true] %s14_s10 }
   0x3   :  { %s320_s12 = smov 8  }
   0x4   :  { %20 = dma.hbm_to_vmem [thread:$0]  %s13_s8, 256, %s15_s10, [#allocation3], %s319_s11, %s319_s11, %s320_s12  }
   0x5   :  { %314 = dma.done.wait [#allocation3], 256  }
   0x6   :  { %315 = vsyncadd [#allocation3], 4294967040  ;;  %v345_v0 = vld [vmem:[#allocation2 + $0x8] sm:$0xff]  ;;  %v321_v15 = vmov 683565275   ;;  %v25_v51 = vld [vmem:[#allocation2] sm:$0xff] }
   0x7   :  { %v30_v1 = vshrl.u32 %v345_v0, 9  ;;  %v322_v17 = vmov 2475754826   ;;  %v323_v19 = vmov 2131351028   ;;  %v27_v62 = vshrl.u32 %v25_v51, 9 }
   0x8   :  { %v324_v21 = vmov 2102212464   ;;  %v325_v23 = vmov 920167782   ;;  %v326_v29 = vmov 1326507024  }
   0x9   :  { %v31_v2 = vor.u32 1065353216, %v30_v1  ;;  %s328_s0 = smov [#allocation5]   ;;  %s233_s16 = sshll.u32 %s410_s1, 4  ;;  %s234_s16 = int_to_ptr.hbm [resolvable:$true] %s233_s16 }
   0xa   :  { %s231_s13 = sshll.u32 %s328_s0, 4  ;;  %s232_s13 = int_to_ptr.vmem [resolvable:$true] %s231_s13 }
   0xb   :  { %v348_v3 = vmul.f32 6.2831855, %v31_v2 }
   0xd   :  { %v53_v4 = vand.u32 2139095040, %v348_v3  ;;  %v50_v6 = vand.u32 2147483647, %v348_v3  ;;  %vm52_vm12 = vcmp.lt.s32.totalorder %v348_v3, 0 }
   0xf   :  { %v54_v5 = vshrl.u32 %v53_v4, 23  ;;  %v57_v9 = vand.u32 8388607, %v50_v6  ;;  %vm392_vm13 = vcmp.le.f32.partialorder %v50_v6, 0.7853982 }
  0x11   :  { %v246_v7 = vadd.s32 4294967169, %v54_v5  ;;  %v58_v12 = vor.u32 8388608, %v57_v9 }
  0x13   :  { %v60_v8 = vadd.s32 1, %v246_v7  ;;  %v357_v31 = vshll.u32 %v58_v12, 8 }
  0x15   :  { %vm61_vm0 = vcmp.gt.s32.totalorder %v60_v8, 0  ;;  %v99_v43 = vand.u32 65535, %v357_v31  ;;  %v100_v44 = vshrl.u32 %v357_v31, 16 }
  0x16   :  { %v62_v10 = vsel %vm61_vm0, %v60_v8, 0  ;;  %v327_v8 = vmov 0  }
  0x17   :  { %v64_v11 = vand.u32 31, %v62_v10  ;;  %v354_v13 = vshrl.u32 %v62_v10, 5 }
  0x19   :  { %v65_v14 = vsub.s32 32, %v64_v11  ;;  %v67_v16 = vshll.u32 %v321_v15, %v64_v11  ;;  %v70_v18 = vshll.u32 %v322_v17, %v64_v11  ;;  %v73_v20 = vshll.u32 %v323_v19, %v64_v11 }
  0x1a   :  { %v76_v22 = vshll.u32 %v324_v21, %v64_v11  ;;  %v79_v24 = vshll.u32 %v325_v23, %v64_v11  ;;  %vm82_vm1 = vcmp.lt.s32.totalorder %v354_v13, 1  ;;  %vm85_vm2 = vcmp.lt.s32.totalorder %v354_v13, 4 }
  0x1b   :  { %v68_v25 = vshrl.u32 %v322_v17, %v65_v14  ;;  %v71_v26 = vshrl.u32 %v323_v19, %v65_v14  ;;  %v74_v27 = vshrl.u32 %v324_v21, %v65_v14  ;;  %v77_v28 = vshrl.u32 %v325_v23, %v65_v14 }
  0x1c   :  { %v80_v30 = vshrl.u32 %v326_v29, %v65_v14  ;;  %vm84_vm3 = vcmp.lt.s32.totalorder %v354_v13, 3  ;;  %vm83_vm4 = vcmp.lt.s32.totalorder %v354_v13, 2  ;;  %v66_v52 = vshrl.u32 %v321_v15, %v65_v14 }
  0x1d   :  { %v69_v32 = vor.u32 %v68_v25, %v67_v16  ;;  %v72_v33 = vor.u32 %v71_v26, %v70_v18  ;;  %v75_v34 = vor.u32 %v74_v27, %v73_v20  ;;  %v78_v35 = vor.u32 %v77_v28, %v76_v22 }
  0x1e   :  { %v81_v36 = vor.u32 %v80_v30, %v79_v24  ;;  %v28_v24 = vor.u32 1065353216, %v27_v62 }
  0x1f   :  { %v90_v37 = vsel %vm82_vm1, %v69_v32, %v72_v33  ;;  %v91_v38 = vsel %vm85_vm2, %v78_v35, 920167782  ;;  %v94_v39 = vsel %vm82_vm1, %v72_v33, %v75_v34  ;;  %v86_v2 = vsel %vm82_vm1, %v66_v52, %v69_v32 }
  0x20   :  { %v95_v40 = vsel %vm85_vm2, %v81_v36, 1326507024  ;;  %v92_v41 = vsel %vm84_vm3, %v75_v34, %v91_v38  ;;  %v87_v7 = vsel %vm85_vm2, %v75_v34, 2102212464  ;;  %v33_v32 = vsub.f32 2.0, %v28_v24 }
  0x21   :  { %v96_v42 = vsel %vm84_vm3, %v78_v35, %v95_v40  ;;  %v93_v45 = vsel %vm83_vm4, %v90_v37, %v92_v41  ;;  %v88_v18 = vsel %vm84_vm3, %v72_v33, %v87_v7  ;;  %vm193_vm3 = vweird.f32 %v348_v3 }
  0x22   :  { %v97_v46 = vsel %vm83_vm4, %v94_v39, %v96_v42  ;;  %v123_v49 = vand.u32 65535, %v93_v45  ;;  %v124_v50 = vshrl.u32 %v93_v45, 16  ;;  %v89_v27 = vsel %vm83_vm4, %v86_v2, %v88_v18 }
  0x23   :  { %v101_v47 = vand.u32 65535, %v97_v46  ;;  %v102_v48 = vshrl.u32 %v97_v46, 16  ;;  %v143_v34 = vmul.u32 %v357_v31, %v89_v27  ;;  %260 = vlog2.f32 %v33_v32 }
  0x24   :  { %v125_v56 = vmul.u32 %v123_v49, %v99_v43  ;;  %v126_v57 = vmul.u32 %v124_v50, %v99_v43  ;;  %v127_v58 = vmul.u32 %v123_v49, %v100_v44  ;;  %v128_v63 = vmul.u32 %v124_v50, %v100_v44 }
  0x25   :  { %v103_v53 = vmul.u32 %v101_v47, %v99_v43  ;;  %v104_v54 = vmul.u32 %v102_v48, %v99_v43  ;;  %v105_v55 = vmul.u32 %v101_v47, %v100_v44  ;;  %v106_v59 = vmul.u32 %v102_v48, %v100_v44 }
  0x26   :  { %v129_v1 = vshll.u32 %v126_v57, 16  ;;  %v131_v5 = vshll.u32 %v127_v58, 16  ;;  %v130_v16 = vshrl.u32 %v126_v57, 16  ;;  %v132_v22 = vshrl.u32 %v127_v58, 16 }
  0x27   :  { %v107_v60 = vshll.u32 %v104_v54, 16  ;;  %v109_v61 = vshll.u32 %v105_v55, 16  ;;  %v108_v11 = vshrl.u32 %v104_v54, 16  ;;  %v110_v19 = vshrl.u32 %v105_v55, 16 }
  0x28   :  { %vm133_vm6 = vc.u32 %v125_v56, %v129_v1  ;;  %v135_v10 = vadd.s32 %v129_v1, %v125_v56 }
  0x29   :  { %vm111_vm5 = vc.u32 %v103_v53, %v107_v60  ;;  %v113_v4 = vadd.s32 %v107_v60, %v103_v53  ;;  %v134_v14 = vsel %vm133_vm6, 1, %v327_v8  ;;  %v261_v39 = vpop.eup %260 }
  0x2a   :  { %v112_v9 = vsel %vm111_vm5, 1, %v327_v8  ;;  %v136_v17 = vadd.s32 %v134_v14, %v128_v63  ;;  %vm137_vm8 = vc.u32 %v135_v10, %v131_v5  ;;  %v139_v26 = vadd.s32 %v135_v10, %v131_v5 }
  0x2b   :  { %v114_v12 = vadd.s32 %v112_v9, %v106_v59  ;;  %vm115_vm7 = vc.u32 %v113_v4, %v109_v61  ;;  %v138_v21 = vsel %vm137_vm8, 1, %v327_v8  ;;  %v35_v42 = vmul.f32 0.6931472, %v261_v39 }
  0x2c   :  { %v116_v15 = vsel %vm115_vm7, 1, %v327_v8  ;;  %v140_v23 = vadd.s32 %v138_v21, %v136_v17 }
  0x2d   :  { %v118_v20 = vadd.s32 %v116_v15, %v114_v12  ;;  %v36_v44 = vmul.f32 -2.0, %v35_v42 }
  0x2e   :  { %v141_v28 = vadd.s32 %v140_v23, %v130_v16 }
  0x2f   :  { %v119_v25 = vadd.s32 %v118_v20, %v108_v11  ;;  %262 = vrsqrt.f32 %v36_v44  ;;  %vm44_vm14 = vcmp.eq.f32.partialorder %v36_v44, inf  ;;  %vm46_vm0 = vcmp.eq.f32.partialorder %v36_v44, 0.0 }
  0x30   :  { %v142_v30 = vadd.s32 %v141_v28, %v132_v22 }
  0x31   :  { %v120_v29 = vadd.s32 %v119_v25, %v110_v19 }
  0x32   :  { %v146_v35 = vadd.s32 1, %v142_v30 }
  0x33   :  { %vm145_vm9 = vc.u32 %v120_v29, %v139_v26  ;;  %v144_v47 = vadd.s32 %v139_v26, %v120_v29  ;;  %v47_v26 = vand.u32 2147483648, %v36_v44 }
  0x34   :  { %v147_v33 = vsel %vm145_vm9, %v146_v35, %v142_v30 }
  0x35   :  { %v148_v36 = vadd.s32 %v147_v33, %v143_v34  ;;  %v263_v53 = vpop.eup %262 }
  0x36   :  { %v38_v58 = vmul.f32 %v263_v53, %v36_v44 }
  0x37   :  { %v149_v37 = vadd.s32 536870912, %v148_v36 }
  0x38   :  { %v39_v61 = vmul.f32 %v263_v53, %v38_v58 }
  0x39   :  { %v150_v38 = vshrl.u32 %v149_v37, 30 }
  0x3a   :  { %v40_v2 = vmul.f32 0.5, %v39_v61 }
  0x3b   :  { %v151_v40 = vshll.u32 %v150_v38, 30  ;;  %v174_v4 = vsub.s32 4, %v150_v38 }
  0x3c   :  { %v41_v10 = vsub.f32 1.5, %v40_v2 }
  0x3d   :  { %v152_v41 = vsub.s32 %v148_v36, %v151_v40  ;;  %v175_v11 = vsel %vm52_vm12, %v174_v4, %v150_v38 }
  0x3e   :  { %v177_v6 = vsel %vm392_vm13, 0, %v175_v11  ;;  %v42_v17 = vmul.f32 %v263_v53, %v41_v10 }
  0x3f   :  { %vm153_vm10 = vcmp.lt.s32.totalorder %v152_v41, 0  ;;  %v154_v13 = vsub.s32 0, %v152_v41  ;;  %v194_v20 = vand.u32 3, %v177_v6 }
  0x40   :  { %v43_v23 = vmul.f32 %v42_v17, %v36_v44 }
  0x41   :  { %v155_v43 = vsel %vm153_vm10, %v154_v13, %v152_v41  ;;  %vm199_vm15 = vcmp.eq.s32.totalorder %v194_v20, 2  ;;  %vm196_vm1 = vcmp.eq.s32.totalorder %v194_v20, 0  ;;  %vm195_vm2 = vcmp.lt.s32.totalorder %v194_v20, 2 }
  0x42   :  { %v156_v45 = vclz %v155_v43  ;;  %v45_v29 = vsel %vm44_vm14, %v36_v44, %v43_v23 }
  0x43   :  { %v48_v34 = vsel %vm46_vm0, %v47_v26, %v45_v29 }
  0x44   :  { %v247_v46 = vadd.s32 4294967294, %v156_v45 }
  0x46   :  { %vm248_vm11 = vcmp.lt.s32.totalorder %v247_v46, 0 }
  0x47   :  { %v159_v31 = vsel %vm248_vm11, 0, %v247_v46 }
  0x48   :  { %v160_v48 = vsub.s32 32, %v159_v31  ;;  %v161_v49 = vshll.u32 %v152_v41, %v159_v31  ;;  %v164_v50 = vsub.s32 4294967266, %v159_v31 }
  0x4a   :  { %v162_v51 = vshrl.u32 %v144_v47, %v160_v48  ;;  %v165_v52 = vadd.s32 127, %v164_v50 }
  0x4c   :  { %v163_v54 = vor.u32 %v162_v51, %v161_v49  ;;  %v166_v55 = vshll.u32 %v165_v52, 23 }
  0x4e   :  { %v167_v56 = vor.u32 4788187, %v166_v55  ;;  %v170_v57 = vcvt.s32.f32 %v163_v54 }
  0x50   :  { %v168_v59 = vand.u32 2147483647, %v167_v56 }
  0x52   :  { %v171_v60 = vmul.f32 %v170_v57, %v168_v59 }
  0x54   :  { %v172_v63 = vxor.u32 2147483648, %v171_v60 }
  0x56   :  { %v173_v1 = vsel %vm52_vm12, %v172_v63, %v171_v60 }
  0x57   :  { %v176_v5 = vsel %vm392_vm13, %v348_v3, %v173_v1  ;;  %v219_v3 = vand.u32 1, %v345_v0 }
  0x58   :  { %v178_v7 = vmul.f32 %v176_v5, %v176_v5 }
  0x59   :  { %vm220_vm6 = vcmp.eq.s32.totalorder %v219_v3, 0 }
  0x5a   :  { %v179_v8 = vmul.f32 -0.001358992, %v178_v7  ;;  %v186_v9 = vmul.f32 -0.00019511016, %v178_v7 }
  0x5c   :  { %v180_v12 = vadd.f32 0.041655596, %v179_v8  ;;  %v187_v14 = vadd.f32 0.008332121, %v186_v9 }
  0x5e   :  { %v181_v15 = vmul.f32 %v180_v12, %v178_v7  ;;  %v188_v16 = vmul.f32 %v187_v14, %v178_v7 }
  0x60   :  { %v182_v18 = vadd.f32 -0.4999988, %v181_v15  ;;  %v189_v19 = vadd.f32 -0.16666654, %v188_v16 }
  0x62   :  { %v183_v21 = vmul.f32 %v182_v18, %v178_v7  ;;  %v190_v22 = vmul.f32 %v189_v19, %v178_v7 }
  0x64   :  { %v184_v24 = vadd.f32 1.0, %v183_v21  ;;  %v191_v25 = vadd.f32 1.0, %v190_v22 }
  0x66   :  { %v192_v27 = vmul.f32 %v191_v25, %v176_v5  ;;  %v200_v28 = vxor.u32 2147483648, %v184_v24 }
  0x68   :  { %v197_v30 = vxor.u32 2147483648, %v192_v27  ;;  %v201_v32 = vsel %vm199_vm15, %v200_v28, %v192_v27 }
  0x6a   :  { %v198_v35 = vsel %vm196_vm1, %v184_v24, %v197_v30 }
  0x6b   :  { %v202_v33 = vsel %vm195_vm2, %v198_v35, %v201_v32 }
  0x6c   :  { %v203_v36 = vsel %vm193_vm3, nan, %v202_v33 }
  0x6d   :  { %v204_v37 = vmul.f32 %v203_v36, %v203_v36  ;;  %v223_v38 = vmul.f32 %v203_v36, %v48_v34 }
  0x6f   :  { %v205_v39 = vsub.f32 1.0, %v204_v37  ;;  %224 = vst [vmem:[#allocation5] sm:$0xff] %v223_v38 }
  0x71   :  { %v206_v40 = vmax.f32 %v205_v39, 0.0 }
  0x73   :  { %264 = vrsqrt.f32 %v206_v40  ;;  %vm214_vm4 = vcmp.eq.f32.partialorder %v206_v40, inf  ;;  %v217_v46 = vand.u32 2147483648, %v206_v40  ;;  %vm216_vm5 = vcmp.eq.f32.partialorder %v206_v40, 0.0 }
  0x79   :  { %v265_v41 = vpop.eup %264 }
  0x7a   :  { %v208_v42 = vmul.f32 %v265_v41, %v206_v40 }
  0x7c   :  { %v209_v13 = vmul.f32 %v265_v41, %v208_v42 }
  0x7e   :  { %v210_v43 = vmul.f32 0.5, %v209_v13 }
  0x80   :  { %v211_v44 = vsub.f32 1.5, %v210_v43 }
  0x82   :  { %v212_v45 = vmul.f32 %v265_v41, %v211_v44 }
  0x84   :  { %v213_v47 = vmul.f32 %v212_v45, %v206_v40 }
  0x86   :  { %v215_v31 = vsel %vm214_vm4, %v206_v40, %v213_v47 }
  0x87   :  { %v218_v48 = vsel %vm216_vm5, %v217_v46, %v215_v31 }
  0x88   :  { %v221_v49 = vsub.f32 0.0, %v218_v48 }
  0x8a   :  { %v222_v50 = vsel %vm220_vm6, %v218_v48, %v221_v49 }
  0x8b   :  { %v225_v51 = vmul.f32 %v222_v50, %v48_v34 }
  0x8d   :  { %226 = vst [vmem:[#allocation5 + $0x8] sm:$0xff] %v225_v51 }
  0x8e   :  { %239 = dma.vmem_to_hbm [thread:$0]  %s232_s13, 256, %s234_s16, [#allocation4], %s319_s11, %s319_s11, %s320_s12  }
  0x8f   :  { %316 = dma.done.wait [#allocation4], 256  }
  0x90   :  { %317 = vsyncadd [#allocation4], 4294967040 }
  0x91   :  { %244 = vsyncpa [#allocation3], 1 }
  0x92   :  { %245 = vsyncpa [#allocation4], 1 }

</bundles_post_ra>
